<compile_context>
chip_gen: v5e
topology: v5e:2x2
jax: 0.10.0
libtpu: 0.0.40
codegen_flags: <defaults>
</compile_context>

<pallas_src>
import functools

import jax
import jax.numpy as jnp
from jax.experimental import pallas as pl
from jax.experimental.pallas import tpu as pltpu

NEG_SLOPE = 0.01                 # F.leaky_relu default
LANE = 128
FUSED_MAX_N = 2048               # int8 A (<=4 MiB) + bf16 A copy easily VMEM-resident
RESIDENT_X_BYTES = 8 * 1024 * 1024
VMEM_LIMIT = 48 * 1024 * 1024    # safe on v7x (64 MiB phys); ample on v5e/v6e


def _round_up(x, m):
    return ((x + m - 1) // m) * m


def _pick_tiles(n_pad):
    tk = 128
    for t in (512, 256, 128):
        if n_pad % t == 0:
            tk = t
            break
    tm = tk
    # v7x has 2 TensorCores: keep >= 2 row blocks when possible so the "parallel"
    # axis actually shards across both cores.
    while n_pad // tm < 2 and tm > 128:
        tm //= 2
    return tm, tk


# --------------------------------------------------------------------------------------
# Fused path: both GraphConv layers in ONE pallas_call, everything VMEM-resident.
# Adjacency (int8 0/1) is read from HBM exactly once.
# --------------------------------------------------------------------------------------
def fused_gcn_kernel(adj_ref, x_ref, inv_in_ref, inv_out_ref,
                     w1_ref, b1_ref, w2_ref, b2_ref, out_ref):
    adj = adj_ref[...].astype(jnp.bfloat16)          # int8 {0,1} -> bf16 (exact)

    # ---- layer 1: x already pre-scaled by d_out^-1/2 and cast to bf16 in the wrapper
    agg1 = jnp.dot(adj, x_ref[...], preferred_element_type=jnp.float32)
    agg1 = agg1 * inv_in_ref[...]                    # d_in^-1/2 (dest)
    h1 = jnp.dot(agg1, w1_ref[...], preferred_element_type=jnp.float32) + b1_ref[...]
    h1 = jnp.where(h1 > 0, h1, NEG_SLOPE * h1)       # leaky_relu

    # ---- layer 2 (padded rows neutralized by inv_out == 0 there)
    h1s = (h1 * inv_out_ref[...]).astype(jnp.bfloat16)
    agg2 = jnp.dot(adj, h1s, preferred_element_type=jnp.float32)
    agg2 = agg2 * inv_in_ref[...]
    y = jnp.dot(agg2, w2_ref[...], preferred_element_type=jnp.float32) + b2_ref[...]
    out_ref[...] = y.astype(out_ref.dtype)


def _fused_forward(adj_i8, x_bf16, inv_in, inv_out, w1, b1, w2, b2):
    n_pad = adj_i8.shape[0]
    f_in = x_bf16.shape[1]
    hid = w1.shape[1]
    out_f = w2.shape[1]
    return pl.pallas_call(
        fused_gcn_kernel,
        out_shape=jax.ShapeDtypeStruct((n_pad, out_f), jnp.float32),
        grid_spec=pltpu.PrefetchScalarGridSpec(
            num_scalar_prefetch=0,
            grid=(1,),
            in_specs=[
                pl.BlockSpec((n_pad, n_pad), lambda i: (0, 0)),   # A (int8, resident)
                pl.BlockSpec((n_pad, f_in), lambda i: (0, 0)),    # x * d_out^-1/2 (bf16)
                pl.BlockSpec((n_pad, 1), lambda i: (0, 0)),       # d_in^-1/2
                pl.BlockSpec((n_pad, 1), lambda i: (0, 0)),       # d_out^-1/2
                pl.BlockSpec((f_in, hid), lambda i: (0, 0)),      # W1
                pl.BlockSpec((1, hid), lambda i: (0, 0)),         # b1
                pl.BlockSpec((hid, out_f), lambda i: (0, 0)),     # W2
                pl.BlockSpec((1, out_f), lambda i: (0, 0)),       # b2
            ],
            out_specs=pl.BlockSpec((n_pad, out_f), lambda i: (0, 0)),
        ),
        compiler_params=pltpu.CompilerParams(
            dimension_semantics=("arbitrary",),
            vmem_limit_bytes=VMEM_LIMIT,
        ),
    )(adj_i8, x_bf16, inv_in, inv_out, w1, b1, w2, b2)


# --------------------------------------------------------------------------------------
# Tiled path: one pallas_call per GraphConv layer, (row, K) grid with K (reduction) last,
# f32 VMEM accumulator, bf16 operands, int8 adjacency stream.
# --------------------------------------------------------------------------------------
def gcn_layer_kernel(adj_ref, x_ref, norm_ref, w_ref, b_ref, out_ref, acc_ref, *,
                     apply_leaky_relu, apply_out_scale, x_block_rows):
    k = pl.program_id(1)

    @pl.when(k == 0)
    def _init():
        acc_ref[...] = jnp.zeros_like(acc_ref)

    adj = adj_ref[...].astype(jnp.bfloat16)              # int8 {0,1} -> bf16 (exact)
    if x_block_rows is None:                             # x streamed per-K block (tk, F)
        x_blk = x_ref[...]
    else:                                                # whole-x VMEM-resident slab
        start = pl.multiple_of(k * x_block_rows, x_block_rows)
        x_blk = x_ref[pl.ds(start, x_block_rows), :]
    acc_ref[...] += jnp.dot(adj, x_blk, preferred_element_type=jnp.float32)

    @pl.when(k == pl.num_programs(1) - 1)
    def _finalize():
        agg = acc_ref[...] * norm_ref[:, 0:1]            # d_in^-1/2 (dest rows)
        h = jnp.dot(agg, w_ref[...], preferred_element_type=jnp.float32) + b_ref[...]
        if apply_leaky_relu:
            h = jnp.where(h > 0, h, NEG_SLOPE * h)
        if apply_out_scale:
            h = h * norm_ref[:, 1:2]                     # fold d_out^-1/2 into stored h1
        out_ref[...] = h.astype(out_ref.dtype)           # lane-dense (tm, 128k) store


def _gcn_layer_tiled(adj_i8, x, norm, w, b, *, apply_leaky_relu, apply_out_scale,
                     out_dtype, tm, tk):
    n_pad = adj_i8.shape[0]
    f_in = x.shape[1]
    f_out = w.shape[1]

    # Keep the whole feature / h1 slab VMEM-resident across the K axis when it fits:
    # it is then DMA'd once instead of once per (row, K) grid step.
    x_resident = (x.size * jnp.dtype(x.dtype).itemsize) <= RESIDENT_X_BYTES
    if x_resident:
        x_spec = pl.BlockSpec((n_pad, f_in), lambda i, k: (0, 0))
        x_rows = tk
    else:
        x_spec = pl.BlockSpec((tk, f_in), lambda i, k: (k, 0))
        x_rows = None

    kernel = functools.partial(
        gcn_layer_kernel,
        apply_leaky_relu=apply_leaky_relu,
        apply_out_scale=apply_out_scale,
        x_block_rows=x_rows,
    )

    return pl.pallas_call(
        kernel,
        out_shape=jax.ShapeDtypeStruct((n_pad, f_out), out_dtype),
        grid_spec=pltpu.PrefetchScalarGridSpec(
            num_scalar_prefetch=0,
            grid=(n_pad // tm, n_pad // tk),
            in_specs=[
                pl.BlockSpec((tm, tk), lambda i, k: (i, k)),       # adjacency tile (int8)
                x_spec,                                            # features / h1 (bf16)
                pl.BlockSpec((tm, 2), lambda i, k: (i, 0)),        # [d_in^-1/2, d_out^-1/2]
                pl.BlockSpec((f_in, f_out), lambda i, k: (0, 0)),  # weights (resident)
                pl.BlockSpec((1, f_out), lambda i, k: (0, 0)),     # bias
            ],
            out_specs=pl.BlockSpec((tm, f_out), lambda i, k: (i, 0)),
            scratch_shapes=[pltpu.VMEM((tm, f_in), jnp.float32)],
        ),
        compiler_params=pltpu.CompilerParams(
            dimension_semantics=("parallel", "arbitrary"),
            vmem_limit_bytes=VMEM_LIMIT,
        ),
    )(adj_i8, x, norm, w, b)


# --------------------------------------------------------------------------------------
# Full forward pass
# --------------------------------------------------------------------------------------
@functools.partial(jax.jit, static_argnames=("force_tiled",))
def shallow_net_forward(adj, features, w1, b1, w2, b2, force_tiled=False):
    """shallowNet forward. adj is a dense (N, N) 0/1 matrix, adj[i, j] = 1 <=> edge j->i."""
    n = adj.shape[0]
    in_f, hid = w1.shape
    out_f = w2.shape[1]

    # Pad only to 128 lanes (never to the 512 tile), keeping layout legal with minimal waste.
    n_pad = _round_up(n, LANE)
    in_f_pad = _round_up(in_f, LANE)
    hid_pad = _round_up(hid, LANE)
    out_f_pad = _round_up(out_f, LANE)

    # --- hoisted normalization vectors (tiny XLA reduce, not per-tile in the kernel) ---
    deg_in = jnp.maximum(adj.sum(axis=1), 1.0)     # row sums  (dest in-degree)
    deg_out = jnp.maximum(adj.sum(axis=0), 1.0)    # col sums  (source out-degree)
    inv_in = jax.lax.rsqrt(deg_in)
    inv_out = jax.lax.rsqrt(deg_out)

    # --- layout plumbing: pad everything lane-dense; adjacency -> int8 (0/1 exact) ---
    # NOTE: int8/bf16 adjacency is exact only for 0/1 entries (unweighted graphs).
    adj_p = jnp.pad(adj, ((0, n_pad - n), (0, n_pad - n))).astype(jnp.int8)
    inv_in_p = jnp.pad(inv_in, (0, n_pad - n))
    inv_out_p = jnp.pad(inv_out, (0, n_pad - n))

    # Fold d_out^-1/2 into the features in the wrapper (fuses with the pad/cast).
    x_scaled = features.astype(jnp.float32) * inv_out[:, None]
    x_p = jnp.pad(x_scaled, ((0, n_pad - n), (0, in_f_pad - in_f))).astype(jnp.bfloat16)

    w1_p = jnp.pad(w1, ((0, in_f_pad - in_f), (0, hid_pad - hid)))
    b1_p = jnp.pad(b1.reshape(-1), (0, hid_pad - hid)).reshape(1, hid_pad)
    w2_p = jnp.pad(w2, ((0, hid_pad - hid), (0, out_f_pad - out_f)))
    b2_p = jnp.pad(b2.reshape(-1), (0, out_f_pad - out_f)).reshape(1, out_f_pad)

    if n_pad <= FUSED_MAX_N and not force_tiled:
        # Single fused kernel: A read from HBM once, one launch, everything resident.
        y = _fused_forward(adj_p, x_p,
                           inv_in_p.reshape(n_pad, 1), inv_out_p.reshape(n_pad, 1),
                           w1_p, b1_p, w2_p, b2_p)
    else:
        # Two tiled, pipelined passes over the int8 adjacency; h1 round-trips via HBM
        # as bf16, already pre-scaled by d_out^-1/2 (so padded rows stay exactly zero
        # even when b1 != 0).
        norm = jnp.stack([inv_in_p, inv_out_p], axis=1)   # (n_pad, 2)
        tm, tk = _pick_tiles(n_pad)
        h1 = _gcn_layer_tiled(adj_p, x_p, norm, w1_p, b1_p,
                              apply_leaky_relu=True, apply_out_scale=True,
                              out_dtype=jnp.bfloat16, tm=tm, tk=tk)
        y = _gcn_layer_tiled(adj_p, h1, norm, w2_p, b2_p,
                             apply_leaky_relu=False, apply_out_scale=False,
                             out_dtype=jnp.float32, tm=tm, tk=tk)

    return y[:n, :out_f]


def xavier_uniform(key, fan_in, fan_out):
    bound = jnp.sqrt(6.0 / (fan_in + fan_out))
    return jax.random.uniform(
        key, (fan_in, fan_out), dtype=jnp.float32, minval=-bound, maxval=bound
    )


if __name__ == "__main__":
    IN_FEATS = 4
    HIDDEN = 64
    OUT_FEATS = 3

    def make_graph(key, n):
        k_adj, k_x = jax.random.split(key)
        a = jax.random.bernoulli(k_adj, 0.5, (n, n)).astype(jnp.float32)
        a = jnp.maximum(a, jnp.eye(n, dtype=jnp.float32))      # self-loops
        feats = jax.random.normal(k_x, (n, IN_FEATS), dtype=jnp.float32)
        return a, feats

    def reference(a, feats, w1, b1, w2, b2):
        deg_in = jnp.maximum(a.sum(1, keepdims=True), 1.0)
        deg_out = jnp.maximum(a.sum(0, keepdims=True), 1.0)
        na = a / (jnp.sqrt(deg_in) * jnp.sqrt(deg_out))
        h1 = na @ feats @ w1 + b1
        h1 = jnp.where(h1 > 0, h1, NEG_SLOPE * h1)
        return na @ h1 @ w2 + b2

    key = jax.random.PRNGKey(0)
    kg1, kg2, kw1, kw2, kb1, kb2 = jax.random.split(key, 6)

    w1 = xavier_uniform(kw1, IN_FEATS, HIDDEN)
    w2 = xavier_uniform(kw2, HIDDEN, OUT_FEATS)
    # non-zero biases so the padded-row / normalization invariant is actually exercised
    b1 = 0.1 * jax.random.normal(kb1, (HIDDEN,), dtype=jnp.float32)
    b2 = 0.1 * jax.random.normal(kb2, (OUT_FEATS,), dtype=jnp.float32)

    # bf16 operand streams (f32 accumulation) -> looser tolerance than pure f32
    ATOL = 2e-2
    RTOL = 2e-2

    # --- test 1: shipped toy size (N=8), fused single-call path -----------------------
    adj, feats = make_graph(kg1, 8)
    out = shallow_net_forward(adj, feats, w1, b1, w2, b2)
    jax.block_until_ready(out)
    ref = reference(adj, feats, w1, b1, w2, b2)
    assert out.shape == (8, OUT_FEATS)
    err = float(jnp.max(jnp.abs(out - ref)))
    assert jnp.allclose(out, ref, atol=ATOL, rtol=RTOL), f"fused path max abs err = {err}"

    # --- test 2: larger graph, tiled per-layer path (row x K grid, f32 accumulator) ---
    adj2, feats2 = make_graph(kg2, 300)           # n_pad=384 -> tm=tk=128, grid (3, 3)
    out2 = shallow_net_forward(adj2, feats2, w1, b1, w2, b2, force_tiled=True)
    jax.block_until_ready(out2)
    ref2 = reference(adj2, feats2, w1, b1, w2, b2)
    assert out2.shape == (300, OUT_FEATS)
    err2 = float(jnp.max(jnp.abs(out2 - ref2)))
    assert jnp.allclose(out2, ref2, atol=ATOL, rtol=RTOL), f"tiled path max abs err = {err2}"

    print("KERNEL_OK")
</pallas_src>

<mosaic_0001>
module attributes {stable_mosaic.version = 11 : i64} {
  func.func @fused_gcn_kernel(%arg0: i32, %arg1: memref<128x128xi8, #tpu.memory_space<vmem>>, %arg2: memref<128x128xbf16, #tpu.memory_space<vmem>>, %arg3: memref<128x1xf32, #tpu.memory_space<vmem>>, %arg4: memref<128x1xf32, #tpu.memory_space<vmem>>, %arg5: memref<128x128xf32, #tpu.memory_space<vmem>>, %arg6: memref<1x128xf32, #tpu.memory_space<vmem>>, %arg7: memref<128x128xf32, #tpu.memory_space<vmem>>, %arg8: memref<1x128xf32, #tpu.memory_space<vmem>>, %arg9: memref<128x128xf32, #tpu.memory_space<vmem>>) attributes {dimension_semantics = [#tpu.dimension_semantics<arbitrary>], iteration_bounds = array<i64: 1>, scalar_prefetch = 0 : i64, scratch_operands = 0 : i64, tpu.core_type = #tpu.core_type<tc>, window_params = [{pipeline_mode = #tpu.pipeline_mode<synchronous>, transform_indices = @transform_0, window_bounds = array<i64: 128, 128>}, {pipeline_mode = #tpu.pipeline_mode<synchronous>, transform_indices = @transform_1, window_bounds = array<i64: 128, 128>}, {pipeline_mode = #tpu.pipeline_mode<synchronous>, transform_indices = @transform_2, window_bounds = array<i64: 128, 1>}, {pipeline_mode = #tpu.pipeline_mode<synchronous>, transform_indices = @transform_3, window_bounds = array<i64: 128, 1>}, {pipeline_mode = #tpu.pipeline_mode<synchronous>, transform_indices = @transform_4, window_bounds = array<i64: 128, 128>}, {pipeline_mode = #tpu.pipeline_mode<synchronous>, transform_indices = @transform_5, window_bounds = array<i64: 1, 128>}, {pipeline_mode = #tpu.pipeline_mode<synchronous>, transform_indices = @transform_6, window_bounds = array<i64: 128, 128>}, {pipeline_mode = #tpu.pipeline_mode<synchronous>, transform_indices = @transform_7, window_bounds = array<i64: 1, 128>}, {pipeline_mode = #tpu.pipeline_mode<synchronous>, transform_indices = @transform_8, window_bounds = array<i64: 128, 128>}]} {
    %c0 = arith.constant 0 : index
    %c0_0 = arith.constant 0 : index
    %0 = vector.load %arg1[%c0, %c0_0] : memref<128x128xi8, #tpu.memory_space<vmem>>, vector<128x128xi8>
    %1 = arith.sitofp %0 : vector<128x128xi8> to vector<128x128xbf16>
    %c0_1 = arith.constant 0 : index
    %c0_2 = arith.constant 0 : index
    %2 = vector.load %arg2[%c0_1, %c0_2] : memref<128x128xbf16, #tpu.memory_space<vmem>>, vector<128x128xbf16>
    %cst = arith.constant dense<0.000000e+00> : vector<128x128xf32>
    %3 = tpu.matmul %1, %2, %cst {dimension_numbers = #tpu.dot_dimension_numbers<[1], [0], [0], [1], [0, 0, 1, 1], [], []>} : vector<128x128xbf16>, vector<128x128xbf16>, vector<128x128xf32> -> vector<128x128xf32>
    %c0_3 = arith.constant 0 : index
    %c0_4 = arith.constant 0 : index
    %4 = vector.load %arg3[%c0_3, %c0_4] : memref<128x1xf32, #tpu.memory_space<vmem>>, vector<128x1xf32>
    %5 = vector.broadcast %4 : vector<128x1xf32> to vector<128x128xf32>
    %6 = arith.mulf %3, %5 : vector<128x128xf32>
    %c0_5 = arith.constant 0 : index
    %c0_6 = arith.constant 0 : index
    %7 = vector.load %arg5[%c0_5, %c0_6] : memref<128x128xf32, #tpu.memory_space<vmem>>, vector<128x128xf32>
    %cst_7 = arith.constant dense<0.000000e+00> : vector<128x128xf32>
    %8 = tpu.matmul %6, %7, %cst_7 {dimension_numbers = #tpu.dot_dimension_numbers<[1], [0], [0], [1], [0, 0, 1, 1], [], []>} : vector<128x128xf32>, vector<128x128xf32>, vector<128x128xf32> -> vector<128x128xf32>
    %c0_8 = arith.constant 0 : index
    %c0_9 = arith.constant 0 : index
    %9 = vector.load %arg6[%c0_8, %c0_9] : memref<1x128xf32, #tpu.memory_space<vmem>>, vector<1x128xf32>
    %10 = vector.broadcast %9 : vector<1x128xf32> to vector<128x128xf32>
    %11 = arith.addf %8, %10 : vector<128x128xf32>
    %cst_10 = arith.constant 0.000000e+00 : f32
    %12 = vector.broadcast %cst_10 : f32 to vector<128x128xf32>
    %13 = arith.cmpf ogt, %11, %12 : vector<128x128xf32>
    %cst_11 = arith.constant 0.00999999977 : f32
    %14 = vector.broadcast %cst_11 : f32 to vector<128x128xf32>
    %15 = arith.mulf %14, %11 : vector<128x128xf32>
    %16 = arith.select %13, %11, %15 : vector<128x128xi1>, vector<128x128xf32>
    %c0_12 = arith.constant 0 : index
    %c0_13 = arith.constant 0 : index
    %17 = vector.load %arg4[%c0_12, %c0_13] : memref<128x1xf32, #tpu.memory_space<vmem>>, vector<128x1xf32>
    %18 = vector.broadcast %17 : vector<128x1xf32> to vector<128x128xf32>
    %19 = arith.mulf %16, %18 : vector<128x128xf32>
    %20 = arith.truncf %19 : vector<128x128xf32> to vector<128x128xbf16>
    %cst_14 = arith.constant dense<0.000000e+00> : vector<128x128xf32>
    %21 = tpu.matmul %1, %20, %cst_14 {dimension_numbers = #tpu.dot_dimension_numbers<[1], [0], [0], [1], [0, 0, 1, 1], [], []>} : vector<128x128xbf16>, vector<128x128xbf16>, vector<128x128xf32> -> vector<128x128xf32>
    %c0_15 = arith.constant 0 : index
    %c0_16 = arith.constant 0 : index
    %22 = vector.load %arg3[%c0_15, %c0_16] : memref<128x1xf32, #tpu.memory_space<vmem>>, vector<128x1xf32>
    %23 = vector.broadcast %22 : vector<128x1xf32> to vector<128x128xf32>
    %24 = arith.mulf %21, %23 : vector<128x128xf32>
    %c0_17 = arith.constant 0 : index
    %c0_18 = arith.constant 0 : index
    %25 = vector.load %arg7[%c0_17, %c0_18] : memref<128x128xf32, #tpu.memory_space<vmem>>, vector<128x128xf32>
    %cst_19 = arith.constant dense<0.000000e+00> : vector<128x128xf32>
    %26 = tpu.matmul %24, %25, %cst_19 {dimension_numbers = #tpu.dot_dimension_numbers<[1], [0], [0], [1], [0, 0, 1, 1], [], []>} : vector<128x128xf32>, vector<128x128xf32>, vector<128x128xf32> -> vector<128x128xf32>
    %c0_20 = arith.constant 0 : index
    %c0_21 = arith.constant 0 : index
    %27 = vector.load %arg8[%c0_20, %c0_21] : memref<1x128xf32, #tpu.memory_space<vmem>>, vector<1x128xf32>
    %28 = vector.broadcast %27 : vector<1x128xf32> to vector<128x128xf32>
    %29 = arith.addf %26, %28 : vector<128x128xf32>
    %c0_22 = arith.constant 0 : index
    %c0_23 = arith.constant 0 : index
    %30 = vector.load %arg9[%c0_22, %c0_23] : memref<128x128xf32, #tpu.memory_space<vmem>>, vector<128x128xf32>
    tpu.vector_store %arg9[%c0_22, %c0_23], %29 {strides = array<i32>} : memref<128x128xf32, #tpu.memory_space<vmem>>, vector<128x128xf32>,
    return
  }
  func.func @transform_0(%arg0: i32) -> (i32, i32) {
    %c0_i32 = arith.constant 0 : i32
    %c0_i32_0 = arith.constant 0 : i32
    %c0_i32_1 = arith.constant 0 : i32
    return %c0_i32, %c0_i32_0 : i32, i32
  }
  func.func @transform_1(%arg0: i32) -> (i32, i32) {
    %c0_i32 = arith.constant 0 : i32
    %c0_i32_0 = arith.constant 0 : i32
    %c0_i32_1 = arith.constant 0 : i32
    return %c0_i32, %c0_i32_0 : i32, i32
  }
  func.func @transform_2(%arg0: i32) -> (i32, i32) {
    %c0_i32 = arith.constant 0 : i32
    %c0_i32_0 = arith.constant 0 : i32
    %c0_i32_1 = arith.constant 0 : i32
    return %c0_i32, %c0_i32_0 : i32, i32
  }
  func.func @transform_3(%arg0: i32) -> (i32, i32) {
    %c0_i32 = arith.constant 0 : i32
    %c0_i32_0 = arith.constant 0 : i32
    %c0_i32_1 = arith.constant 0 : i32
    return %c0_i32, %c0_i32_0 : i32, i32
  }
  func.func @transform_4(%arg0: i32) -> (i32, i32) {
    %c0_i32 = arith.constant 0 : i32
    %c0_i32_0 = arith.constant 0 : i32
    %c0_i32_1 = arith.constant 0 : i32
    return %c0_i32, %c0_i32_0 : i32, i32
  }
  func.func @transform_5(%arg0: i32) -> (i32, i32) {
    %c0_i32 = arith.constant 0 : i32
    %c0_i32_0 = arith.constant 0 : i32
    %c0_i32_1 = arith.constant 0 : i32
    return %c0_i32, %c0_i32_0 : i32, i32
  }
  func.func @transform_6(%arg0: i32) -> (i32, i32) {
    %c0_i32 = arith.constant 0 : i32
    %c0_i32_0 = arith.constant 0 : i32
    %c0_i32_1 = arith.constant 0 : i32
    return %c0_i32, %c0_i32_0 : i32, i32
  }
  func.func @transform_7(%arg0: i32) -> (i32, i32) {
    %c0_i32 = arith.constant 0 : i32
    %c0_i32_0 = arith.constant 0 : i32
    %c0_i32_1 = arith.constant 0 : i32
    return %c0_i32, %c0_i32_0 : i32, i32
  }
  func.func @transform_8(%arg0: i32) -> (i32, i32) {
    %c0_i32 = arith.constant 0 : i32
    %c0_i32_0 = arith.constant 0 : i32
    %c0_i32_1 = arith.constant 0 : i32
    return %c0_i32, %c0_i32_0 : i32, i32
  }
}

</mosaic_0001>

<bundles_post_ra>
// kernel: shallow_net_forward.1
= control target key start
LH: loop header
LB: loop body
LE: loop exit
PB: predicated region body
PF: predicated region fallthrough
CT: control target
= control target key end

     0   :  { %v767_v0 = vmov 0   ;;  %s1263_s2 = inlined_call_operand.vmem [shape: f32[128,1], index: 2, kind: input, shape index: {}]   ;;  %s1264_s1 = inlined_call_operand.vmem [shape: bf16[128,128], index: 1, kind: input, shape index: {}]   ;;  %s1265_s0 = inlined_call_operand.vmem [shape: s8[128,128], index: 0, kind: input, shape index: {}]   ;;  %s1266_s3 = inlined_call_operand.vmem [shape: f32[128,1], index: 3, kind: input, shape index: {}]   ;;  %s1267_s4 = inlined_call_operand.vmem [shape: f32[128,128], index: 4, kind: input, shape index: {}]   ;;  %s1268_s5 = inlined_call_operand.vmem [shape: f32[1,128], index: 5, kind: input, shape index: {}]   ;;  %s1269_s6 = inlined_call_operand.vmem [shape: f32[128,128], index: 6, kind: input, shape index: {}]   ;;  %s1270_s7 = inlined_call_operand.vmem [shape: f32[1,128], index: 7, kind: input, shape index: {}]   ;;  %s1271_s8 = inlined_call_operand.vmem [shape: f32[128,128], index: 8, kind: output, shape index: {}]  }
   0x1   :  { %763 = vset.pattern.permute.xlu1 %v767_v0  ;;  %762 = vset.pattern.permute.xlu0 %v767_v0  ;;  %v188_v1 = vld [vmem:[%s1263_s2 + $0x10] sm:$0xff]  ;;  %v186_v2 = vld [vmem:[%s1263_s2] sm:$0xff]  ;;  %v760_v3 = vld [vmem:[%s1264_s1 + $0x38] sm:$0xff] }
   0x2   :  { %214 = vperm.xlu1 %763, %v188_v1   ;;  %204 = vperm.xlu0 %762, %v186_v2   ;;  %v759_v4 = vld [vmem:[%s1264_s1 + $0x30] sm:$0xff]  ;;  %v190_v5 = vld [vmem:[%s1263_s2 + $0x20] sm:$0xff]  ;;  %v189_v6 = vld [vmem:[%s1263_s2 + $0x18] sm:$0xff] }
   0x3   :  { %137 = vmatpush.bf16.msra.mxu0 %v760_v3  ;;  %764 = vset.pattern.permute.xlu2 %v767_v0  ;;  %v187_v7 = vld [vmem:[%s1263_s2 + $0x8] sm:$0xff]  ;;  %v757_v9 = vld [vmem:[%s1264_s1 + $0x20] sm:$0xff]  ;;  %v193_v11 = vld [vmem:[%s1263_s2 + $0x38] sm:$0xff] }
   0x4   :  { %v758_v8 = vld [vmem:[%s1264_s1 + $0x28] sm:$0xff]  ;;  %224 = vperm.xlu2 %764, %v190_v5   ;;  %v192_v12 = vld [vmem:[%s1263_s2 + $0x30] sm:$0xff]  ;;  %v756_v13 = vld [vmem:[%s1264_s1 + $0x18] sm:$0xff] }
   0x5   :  { %v191_v10 = vld [vmem:[%s1263_s2 + $0x28] sm:$0xff]  ;;  %v755_v14 = vld [vmem:[%s1264_s1 + $0x10] sm:$0xff]  ;;  %v29_v15 = vld [vmem:[%s1265_s0] sm:$0xff] }
   0x6   :  { %v194_v16 = vld [vmem:[%s1263_s2 + $0x40] sm:$0xff]  ;;  %v196_v17 = vld [vmem:[%s1263_s2 + $0x50] sm:$0xff]  ;;  %v195_v18 = vld [vmem:[%s1263_s2 + $0x48] sm:$0xff]  ;;  %v33_v20 = vunpack.c.0.s8 %v29_v15  ;;  %v34_v21 = vunpack.c.1.s8 %v29_v15  ;;  %v35_v32 = vunpack.c.2.s8 %v29_v15  ;;  %v36_v33 = vunpack.c.3.s8 %v29_v15 }
   0x7   :  { %138 = vmatpush.bf16.msra.mxu0 %v759_v4  ;;  %v754_v19 = vld [vmem:[%s1264_s1 + $0x8] sm:$0xff]  ;;  %v753_v22 = vld [vmem:[%s1264_s1] sm:$0xff]  ;;  %v197_v25 = vld [vmem:[%s1263_s2 + $0x58] sm:$0xff] }
   0x8   :  { %v49_v23 = vcvt.s32.f32 %v33_v20  ;;  %v50_v24 = vcvt.s32.f32 %v34_v21  ;;  %v199_v26 = vld [vmem:[%s1263_s2 + $0x68] sm:$0xff]  ;;  %v198_v27 = vld [vmem:[%s1263_s2 + $0x60] sm:$0xff]  ;;  %v200_v29 = vld [vmem:[%s1263_s2 + $0x70] sm:$0xff]  ;;  %v51_v34 = vcvt.s32.f32 %v35_v32  ;;  %v52_v35 = vcvt.s32.f32 %v36_v33 }
   0x9   :  { %v445_v30 = vld [vmem:[%s1266_s3 + $0x70] sm:$0xff]  ;;  %v201_v31 = vld [vmem:[%s1263_s2 + $0x78] sm:$0xff]  ;;  %v444_v37 = vld [vmem:[%s1266_s3 + $0x68] sm:$0xff] }
   0xa   :  { %219 = vperm.xlu1 %763, %v189_v6   ;;  %209 = vperm.xlu0 %762, %v187_v7   ;;  %v882_v28 = vpack.c.bf16 %v50_v24, %v49_v23  ;;  %v446_v36 = vld [vmem:[%s1266_s3 + $0x78] sm:$0xff]  ;;  %v443_v38 = vld [vmem:[%s1266_s3 + $0x60] sm:$0xff]  ;;  %v903_v39 = vpack.c.bf16 %v52_v35, %v51_v34  ;;  %v30_v40 = vld [vmem:[%s1265_s0 + $0x8] sm:$0xff] }
   0xb   :  { %139 = vmatpush.bf16.msra.mxu0 %v758_v8  ;;  %v441_v41 = vld [vmem:[%s1266_s3 + $0x50] sm:$0xff]  ;;  %v439_v42 = vld [vmem:[%s1266_s3 + $0x40] sm:$0xff]  ;;  %v442_v43 = vld [vmem:[%s1266_s3 + $0x58] sm:$0xff]  ;;  %v37_v44 = vunpack.c.0.s8 %v30_v40  ;;  %v38_v45 = vunpack.c.1.s8 %v30_v40  ;;  %v39_v55 = vunpack.c.2.s8 %v30_v40  ;;  %v40_v56 = vunpack.c.3.s8 %v30_v40 }
   0xc   :  { %229 = vperm.xlu2 %764, %v191_v10   ;;  %v440_v48 = vld [vmem:[%s1266_s3 + $0x48] sm:$0xff]  ;;  %v438_v49 = vld [vmem:[%s1266_s3 + $0x38] sm:$0xff]  ;;  %v437_v50 = vld [vmem:[%s1266_s3 + $0x30] sm:$0xff] }
   0xd   :  { %v53_v46 = vcvt.s32.f32 %v37_v44  ;;  %v54_v47 = vcvt.s32.f32 %v38_v45  ;;  %v435_v52 = vld [vmem:[%s1266_s3 + $0x20] sm:$0xff]  ;;  %v433_v53 = vld [vmem:[%s1266_s3 + $0x10] sm:$0xff]  ;;  %v436_v54 = vld [vmem:[%s1266_s3 + $0x28] sm:$0xff]  ;;  %v55_v57 = vcvt.s32.f32 %v39_v55  ;;  %v56_v58 = vcvt.s32.f32 %v40_v56 }
   0xe   :  { %v434_v59 = vld [vmem:[%s1266_s3 + $0x18] sm:$0xff]  ;;  %v432_v60 = vld [vmem:[%s1266_s3 + $0x8] sm:$0xff]  ;;  %v431_v61 = vld [vmem:[%s1266_s3] sm:$0xff] }
   0xf   :  { %140 = vmatpush.bf16.msra.mxu0 %v757_v9  ;;  %v927_v51 = vpack.c.bf16 %v54_v47, %v53_v46  ;;  %v948_v62 = vpack.c.bf16 %v56_v58, %v55_v57  ;;  %v31_v63 = vld [vmem:[%s1265_s0 + $0x10] sm:$0xff]  ;;  %v313_v5 = vld [vmem:[%s1267_s4 + $0x78] sm:$0xff]  ;;  %v311_v7 = vld [vmem:[%s1267_s4 + $0x68] sm:$0xff] }
  0x10   :  { %v41_v0 = vunpack.c.0.s8 %v31_v63  ;;  %v42_v1 = vunpack.c.1.s8 %v31_v63  ;;  %318 = vmatpush.msra.mxu1 %v313_v5  ;;  %v312_v6 = vld [vmem:[%s1267_s4 + $0x70] sm:$0xff]  ;;  %v43_v8 = vunpack.c.2.s8 %v31_v63  ;;  %v44_v9 = vunpack.c.3.s8 %v31_v63  ;;  %v310_v10 = vld [vmem:[%s1267_s4 + $0x60] sm:$0xff]  ;;  %v307_v15 = vld [vmem:[%s1267_s4 + $0x48] sm:$0xff] }
  0x11   :  { %v304_v20 = vld [vmem:[%s1267_s4 + $0x30] sm:$0xff]  ;;  %v303_v21 = vld [vmem:[%s1267_s4 + $0x28] sm:$0xff]  ;;  %v302_v24 = vld [vmem:[%s1267_s4 + $0x20] sm:$0xff] }
  0x12   :  { %239 = vperm.xlu1 %763, %v193_v11   ;;  %234 = vperm.xlu0 %762, %v192_v12   ;;  %v57_v2 = vcvt.s32.f32 %v41_v0  ;;  %v58_v3 = vcvt.s32.f32 %v42_v1  ;;  %v309_v11 = vld [vmem:[%s1267_s4 + $0x58] sm:$0xff]  ;;  %v59_v12 = vcvt.s32.f32 %v43_v8  ;;  %v298_v32 = vld [vmem:[%s1267_s4] sm:$0xff] }
  0x13   :  { %141 = vmatpush.bf16.msra.mxu0 %v756_v13  ;;  %319 = vmatpush.msra.mxu1 %v312_v6  ;;  %v60_v13 = vcvt.s32.f32 %v44_v9 }
  0x14   :  { %244 = vperm.xlu2 %764, %v194_v16   ;;  %v954_v4 = vpack.c.bf16 %v58_v3, %v57_v2 }
  0x15   :  { %320 = vmatpush.msra.mxu1 %v311_v7  ;;  %v978_v16 = vpack.c.bf16 %v60_v13, %v59_v12 }
  0x17   :  { %142 = vmatpush.bf16.msra.mxu0 %v755_v14  ;;  %321 = vmatpush.msra.mxu1 %v310_v10  ;;  %v308_v14 = vld [vmem:[%s1267_s4 + $0x50] sm:$0xff] }
  0x19   :  { %322 = vmatpush.msra.mxu1 %v309_v11 }
  0x1a   :  { %254 = vperm.xlu1 %763, %v196_v17   ;;  %249 = vperm.xlu0 %762, %v195_v18   ;;  %v306_v17 = vld [vmem:[%s1267_s4 + $0x40] sm:$0xff]  ;;  %v305_v18 = vld [vmem:[%s1267_s4 + $0x38] sm:$0xff] }
  0x1b   :  { %143 = vmatpush.bf16.msra.mxu0 %v754_v19  ;;  %323 = vmatpush.msra.mxu1 %v308_v14  ;;  %v32_v19 = vld [vmem:[%s1265_s0 + $0x18] sm:$0xff] }
  0x1c   :  { %259 = vperm.xlu2 %764, %v197_v25   ;;  %v46_v23 = vunpack.c.1.s8 %v32_v19  ;;  %v301_v25 = vld [vmem:[%s1267_s4 + $0x18] sm:$0xff]  ;;  %v47_v33 = vunpack.c.2.s8 %v32_v19  ;;  %v48_v34 = vunpack.c.3.s8 %v32_v19 }
  0x1d   :  { %324 = vmatpush.msra.mxu1 %v307_v15 }
  0x1e   :  { %v63_v35 = vcvt.s32.f32 %v47_v33 }
  0x1f   :  { %144 = vmatpush.bf16.msra.mxu0 %v753_v22  ;;  %325 = vmatpush.msra.mxu1 %v306_v17  ;;  %v45_v22 = vunpack.c.0.s8 %v32_v19 }
  0x21   :  { %326 = vmatpush.msra.mxu1 %v305_v18 }
  0x22   :  { %269 = vperm.xlu1 %763, %v199_v26   ;;  %264 = vperm.xlu0 %762, %v198_v27   ;;  %v61_v26 = vcvt.s32.f32 %v45_v22  ;;  %v62_v27 = vcvt.s32.f32 %v46_v23 }
  0x23   :  { %145 = vmatmul.bf16.vlgmr.msra.gmra.mxu0 %v882_v28  ;;  %327 = vmatpush.msra.mxu1 %v304_v20 }
  0x24   :  { %274 = vperm.xlu2 %764, %v200_v29   ;;  %v300_v29 = vld [vmem:[%s1267_s4 + $0x10] sm:$0xff] }
  0x25   :  { %328 = vmatpush.msra.mxu1 %v303_v21 }
  0x27   :  { %329 = vmatpush.msra.mxu1 %v302_v24 }
  0x29   :  { %330 = vmatpush.msra.mxu1 %v301_v25 }
  0x2a   :  { %519 = vperm.xlu1 %763, %v445_v30   ;;  %279 = vperm.xlu0 %762, %v201_v31   ;;  %v299_v30 = vld [vmem:[%s1267_s4 + $0x8] sm:$0xff]  ;;  %v1008_v31 = vpack.c.bf16 %v62_v27, %v61_v26 }
  0x2b   :  { %331 = vmatpush.msra.mxu1 %v300_v29 }
  0x2c   :  { %524 = vperm.xlu2 %764, %v446_v36   ;;  %v64_v36 = vcvt.s32.f32 %v48_v34 }
  0x2d   :  { %332 = vmatpush.msra.mxu1 %v299_v30 }
  0x2f   :  { %333 = vmatpush.msra.mxu1 %v298_v32 }
  0x32   :  { %514 = vperm.xlu1 %763, %v444_v37   ;;  %509 = vperm.xlu0 %762, %v443_v38   ;;  %v1014_v37 = vpack.c.bf16 %v64_v36, %v63_v35 }
  0x33   :  { %150 = vmatmul.bf16.gmra.mxu0 %v903_v39 }
  0x34   :  { %499 = vperm.xlu2 %764, %v441_v41  }
  0x3a   :  { %489 = vperm.xlu1 %763, %v439_v42   ;;  %504 = vperm.xlu0 %762, %v442_v43  }
  0x3c   :  { %494 = vperm.xlu2 %764, %v440_v48  }
  0x42   :  { %484 = vperm.xlu1 %763, %v438_v49   ;;  %479 = vperm.xlu0 %762, %v437_v50  }
  0x43   :  { %155 = vmatmul.bf16.gmra.mxu0 %v927_v51 }
  0x44   :  { %469 = vperm.xlu2 %764, %v435_v52  }
  0x4a   :  { %459 = vperm.xlu1 %763, %v433_v53   ;;  %474 = vperm.xlu0 %762, %v436_v54  }
  0x4c   :  { %464 = vperm.xlu2 %764, %v434_v59  }
  0x52   :  { %454 = vperm.xlu1 %763, %v432_v60   ;;  %449 = vperm.xlu0 %762, %v431_v61  }
  0x53   :  { %160 = vmatmul.bf16.gmra.mxu0 %v948_v62 }
  0x5e   :  { %v1029_v52 = vpop.permute.xlu2 %224 }
  0x63   :  { %165 = vmatmul.bf16.gmra.mxu0 %v954_v4 }
  0x66   :  { %v1032_v55 = vpop.permute.xlu2 %229 }
  0x6e   :  { %v1041_v1 = vpop.permute.xlu2 %244 }
  0x73   :  { %170 = vmatmul.bf16.gmra.mxu0 %v978_v16 }
  0x74   :  { %v1017_v38 = vpop.permute.xlu0 %204  ;;  %v1023_v45 = vpop.permute.xlu1 %214 }
  0x76   :  { %v1054_v13 = vpop.permute.xlu2 %259 }
  0x7c   :  { %v1020_v42 = vpop.permute.xlu0 %209  ;;  %v1026_v48 = vpop.permute.xlu1 %219 }
  0x7e   :  { %v1067_v25 = vpop.permute.xlu2 %274 }
  0x83   :  { %175 = vmatmul.bf16.gmra.mxu0 %v1008_v31 }
  0x84   :  { %v1035_v58 = vpop.permute.xlu0 %234  ;;  %v1038_v61 = vpop.permute.xlu1 %239 }
  0x86   :  { %v1074_v32 = vpop.permute.xlu2 %524 }
  0x8c   :  { %v1044_v5 = vpop.permute.xlu1 %254  ;;  %v1046_v6 = vpop.permute.xlu0 %249 }
  0x93   :  { %180 = vmatmul.bf16.gmra.mxu0 %v1014_v37 }
  0x94   :  { %v1049_v10 = vpop.permute.xlu1 %269  ;;  %v1051_v11 = vpop.permute.xlu0 %264 }
  0x9c   :  { %v1057_v17 = vpop.permute.xlu1 %519  ;;  %v1059_v18 = vpop.permute.xlu0 %279 }
  0xa0   :  { %v146_v40 = vpop.f32.mrf.mxu0 }
  0xa1   :  { %v282_v41 = vmul.f32 %v1017_v38, %v146_v40  ;;  %v1079_v40 = vpop.permute.xlu2 %499 }
  0xa3   :  { %334 = vmatmul.f32.vlgmr.msra.gmra.mxu1 %v282_v41  ;;  %v1084_v41 = vld [vmem:[%s1268_s5] ss:$0 sm:$0xff] }
  0xa4   :  { %v1062_v21 = vpop.permute.xlu1 %514  ;;  %v1064_v22 = vpop.permute.xlu0 %509 }
  0xa8   :  { %v148_v43 = vpop.f32.mrf.mxu0 }
  0xa9   :  { %v283_v44 = vmul.f32 %v1020_v42, %v148_v43 }
  0xab   :  { %337 = vmatmul.f32.gmra.mxu1 %v283_v44 }
  0xac   :  { %v1069_v26 = vpop.permute.xlu1 %489  ;;  %v1071_v27 = vpop.permute.xlu0 %504 }
  0xb0   :  { %v151_v46 = vpop.f32.mrf.mxu0 }
  0xb1   :  { %v284_v47 = vmul.f32 %v1023_v45, %v151_v46 }
  0xb3   :  { %340 = vmatmul.f32.gmra.mxu1 %v284_v47 }
  0xb4   :  { %v1076_v34 = vpop.permute.xlu1 %484  ;;  %v480_v35 = vpop.permute.xlu0 %479 }
  0xb8   :  { %v153_v49 = vpop.f32.mrf.mxu0 }
  0xb9   :  { %v285_v50 = vmul.f32 %v1026_v48, %v153_v49 }
  0xbb   :  { %343 = vmatmul.f32.gmra.mxu1 %v285_v50 }
  0xbc   :  { %v460_v44 = vpop.permute.xlu1 %459  ;;  %v475_v46 = vpop.permute.xlu0 %474 }
  0xc0   :  { %v156_v53 = vpop.f32.mrf.mxu0 }
  0xc1   :  { %v286_v54 = vmul.f32 %v1029_v52, %v156_v53  ;;  %v1087_v53 = vpop.permute.xlu2 %494 }
  0xc3   :  { %346 = vmatmul.f32.gmra.mxu1 %v286_v54 }
  0xc8   :  { %v158_v56 = vpop.f32.mrf.mxu0 }
  0xc9   :  { %v287_v57 = vmul.f32 %v1032_v55, %v158_v56 }
  0xcb   :  { %349 = vmatmul.f32.gmra.mxu1 %v287_v57 }
  0xd0   :  { %v161_v59 = vpop.f32.mrf.mxu0 }
  0xd1   :  { %v288_v60 = vmul.f32 %v1035_v58, %v161_v59  ;;  %v455_v59 = vpop.permute.xlu1 %454 }
  0xd3   :  { %352 = vmatmul.f32.gmra.mxu1 %v288_v60  ;;  %v450_v60 = vpop.permute.xlu0 %449 }
  0xd8   :  { %v163_v63 = vpop.f32.mrf.mxu0 }
  0xd9   :  { %v289_v0 = vmul.f32 %v1038_v61, %v163_v63 }
  0xdb   :  { %355 = vmatmul.f32.gmra.mxu1 %v289_v0 }
  0xe0   :  { %v166_v2 = vpop.f32.mrf.mxu0 }
  0xe1   :  { %v290_v3 = vmul.f32 %v1041_v1, %v166_v2 }
  0xe3   :  { %358 = vmatmul.f32.gmra.mxu1 %v290_v3 }
  0xe8   :  { %v168_v7 = vpop.f32.mrf.mxu0 }
  0xe9   :  { %v291_v8 = vmul.f32 %v1046_v6, %v168_v7 }
  0xeb   :  { %361 = vmatmul.f32.gmra.mxu1 %v291_v8  ;;  %v470_v8 = vpop.permute.xlu2 %469 }
  0xf0   :  { %v171_v9 = vpop.f32.mrf.mxu0 }
  0xf1   :  { %v292_v12 = vmul.f32 %v1044_v5, %v171_v9 }
  0xf3   :  { %364 = vmatmul.f32.gmra.mxu1 %v292_v12 }
  0xf8   :  { %v173_v14 = vpop.f32.mrf.mxu0 }
  0xf9   :  { %v293_v15 = vmul.f32 %v1054_v13, %v173_v14 }
  0xfb   :  { %367 = vmatmul.f32.gmra.mxu1 %v293_v15 }
 0x100   :  { %v176_v19 = vpop.f32.mrf.mxu0 }
 0x101   :  { %v294_v20 = vmul.f32 %v1051_v11, %v176_v19 }
 0x103   :  { %370 = vmatmul.f32.gmra.mxu1 %v294_v20 }
 0x108   :  { %v178_v23 = vpop.f32.mrf.mxu0 }
 0x109   :  { %v295_v24 = vmul.f32 %v1049_v10, %v178_v23  ;;  %v465_v23 = vpop.permute.xlu2 %464 }
 0x10b   :  { %373 = vmatmul.f32.gmra.mxu1 %v295_v24 }
 0x110   :  { %v181_v29 = vpop.f32.mrf.mxu0 }
 0x111   :  { %v296_v30 = vmul.f32 %v1067_v25, %v181_v29 }
 0x113   :  { %376 = vmatmul.f32.gmra.mxu1 %v296_v30 }
 0x118   :  { %v183_v33 = vpop.f32.mrf.mxu0 }
 0x119   :  { %v297_v36 = vmul.f32 %v1059_v18, %v183_v33 }
 0x11b   :  { %379 = vmatmul.f32.gmra.mxu1 %v297_v36 }
 0x120   :  { %v335_v43 = vpop.f32.mrf.mxu1 }
 0x121   :  { %v336_v47 = vadd.f32 %v1084_v41, %v335_v43 }
 0x123   :  { %v399_v49 = vmul.f32 0.01, %v336_v47  ;;  %vm383_vm0 = vcmp.gt.f32.partialorder %v336_v47, 0.0 }
 0x125   :  { %v415_v57 = vsel %vm383_vm0, %v336_v47, %v399_v49 }
 0x126   :  { %v1090_v0 = vmul.f32 %v450_v60, %v415_v57 }
 0x128   :  { %v338_v50 = vpop.f32.mrf.mxu1 }
 0x129   :  { %v339_v54 = vadd.f32 %v1084_v41, %v338_v50 }
 0x12b   :  { %vm384_vm1 = vcmp.gt.f32.partialorder %v339_v54, 0.0  ;;  %v400_v56 = vmul.f32 0.01, %v339_v54 }
 0x12d   :  { %v416_v63 = vsel %vm384_vm1, %v339_v54, %v400_v56 }
 0x12e   :  { %v1092_v2 = vmul.f32 %v455_v59, %v416_v63 }
 0x130   :  { %v341_v3 = vpop.f32.mrf.mxu1 }
 0x131   :  { %v342_v9 = vadd.f32 %v1084_v41, %v341_v3 }
 0x133   :  { %v401_v12 = vmul.f32 0.01, %v342_v9  ;;  %vm385_vm2 = vcmp.gt.f32.partialorder %v342_v9, 0.0 }
 0x135   :  { %v417_v20 = vsel %vm385_vm2, %v342_v9, %v401_v12 }
 0x136   :  { %v1098_v29 = vmul.f32 %v460_v44, %v417_v20 }
 0x138   :  { %v344_v14 = vpop.f32.mrf.mxu1 }
 0x139   :  { %v345_v15 = vadd.f32 %v1084_v41, %v344_v14 }
 0x13b   :  { %vm386_vm3 = vcmp.gt.f32.partialorder %v345_v15, 0.0  ;;  %v402_v19 = vmul.f32 0.01, %v345_v15 }
 0x13d   :  { %v418_v24 = vsel %vm386_vm3, %v345_v15, %v402_v19 }
 0x13e   :  { %v1100_v30 = vmul.f32 %v465_v23, %v418_v24 }
 0x140   :  { %v347_v33 = vpop.f32.mrf.mxu1 }
 0x141   :  { %v348_v43 = vadd.f32 %v1084_v41, %v347_v33 }
 0x143   :  { %v403_v47 = vmul.f32 0.01, %v348_v43  ;;  %vm387_vm4 = vcmp.gt.f32.partialorder %v348_v43, 0.0 }
 0x145   :  { %v419_v56 = vsel %vm387_vm4, %v348_v43, %v403_v47 }
 0x146   :  { %v1106_v59 = vmul.f32 %v470_v8, %v419_v56 }
 0x148   :  { %v350_v49 = vpop.f32.mrf.mxu1 }
 0x149   :  { %v351_v50 = vadd.f32 %v1084_v41, %v350_v49 }
 0x14b   :  { %vm388_vm5 = vcmp.gt.f32.partialorder %v351_v50, 0.0  ;;  %v404_v54 = vmul.f32 0.01, %v351_v50 }
 0x14d   :  { %v420_v57 = vsel %vm388_vm5, %v351_v50, %v404_v54 }
 0x14e   :  { %v1108_v44 = vmul.f32 %v475_v46, %v420_v57 }
 0x150   :  { %v353_v60 = vpop.f32.mrf.mxu1 }
 0x151   :  { %v354_v3 = vadd.f32 %v1084_v41, %v353_v60 }
 0x153   :  { %v405_v9 = vmul.f32 0.01, %v354_v3  ;;  %vm389_vm6 = vcmp.gt.f32.partialorder %v354_v3, 0.0 }
 0x155   :  { %v421_v19 = vsel %vm389_vm6, %v354_v3, %v405_v9 }
 0x156   :  { %v533_v23 = vmul.f32 %v480_v35, %v421_v19 }
 0x158   :  { %v356_v12 = vpop.f32.mrf.mxu1 }
 0x159   :  { %v357_v14 = vadd.f32 %v1084_v41, %v356_v12 }
 0x15b   :  { %vm390_vm7 = vcmp.gt.f32.partialorder %v357_v14, 0.0  ;;  %v406_v15 = vmul.f32 0.01, %v357_v14 }
 0x15d   :  { %v422_v20 = vsel %vm390_vm7, %v357_v14, %v406_v15 }
 0x15e   :  { %v534_v8 = vmul.f32 %v1076_v34, %v422_v20 }
 0x160   :  { %v359_v46 = vpop.f32.mrf.mxu1  ;;  %v546_v24 = vpack.c.bf16 %v534_v8, %v533_v23 }
 0x168   :  { %v362_v33 = vpop.f32.mrf.mxu1 }
 0x169   :  { %v363_v23 = vadd.f32 %v1084_v41, %v362_v33 }
 0x16b   :  { %vm392_vm14 = vcmp.gt.f32.partialorder %v363_v23, 0.0 }
 0x170   :  { %v365_v43 = vpop.f32.mrf.mxu1 }
 0x171   :  { %v366_v14 = vadd.f32 %v1084_v41, %v365_v43 }
 0x173   :  { %v409_v7 = vmul.f32 0.01, %v366_v14  ;;  %vm393_vm13 = vcmp.gt.f32.partialorder %v366_v14, 0.0 }
 0x178   :  { %v368_v47 = vpop.f32.mrf.mxu1 }
 0x179   :  { %v369_v35 = vadd.f32 %v1084_v41, %v368_v47 }
 0x17b   :  { %v410_v8 = vmul.f32 0.01, %v369_v35  ;;  %vm394_vm12 = vcmp.gt.f32.partialorder %v369_v35, 0.0 }
 0x180   :  { %v371_v49 = vpop.f32.mrf.mxu1 }
 0x181   :  { %v372_v60 = vadd.f32 %v1084_v41, %v371_v49 }
 0x183   :  { %v411_v15 = vmul.f32 0.01, %v372_v60  ;;  %vm395_vm11 = vcmp.gt.f32.partialorder %v372_v60, 0.0 }
 0x185   :  { %v427_v43 = vsel %vm395_vm11, %v372_v60, %v411_v15 }
 0x186   :  { %v539_v33 = vmul.f32 %v1064_v22, %v427_v43  ;;  %v1272_v22 = vpack.c.bf16 %v1108_v44, %v1106_v59  ;;  %v618_v59 = vld [vmem:[%s1269_s6 + $0x10] sm:$0xff]  ;;  %v617_v44 = vld [vmem:[%s1269_s6 + $0x8] sm:$0xff] }
 0x188   :  { %v374_v50 = vpop.f32.mrf.mxu1 }
 0x189   :  { %v375_v57 = vadd.f32 %v1084_v41, %v374_v50 }
 0x18b   :  { %v412_v34 = vmul.f32 0.01, %v375_v57  ;;  %vm396_vm9 = vcmp.gt.f32.partialorder %v375_v57, 0.0 }
 0x18d   :  { %v428_v50 = vsel %vm396_vm9, %v375_v57, %v412_v34  ;;  %v425_v34 = vsel %vm393_vm13, %v366_v14, %v409_v7  ;;  %v621_v7 = vld [vmem:[%s1269_s6 + $0x28] sm:$0xff] }
 0x18e   :  { %v540_v63 = vmul.f32 %v1062_v21, %v428_v50 }
 0x190   :  { %v377_v54 = vpop.f32.mrf.mxu1 }
 0x191   :  { %v378_v56 = vadd.f32 %v1084_v41, %v377_v54 }
 0x193   :  { %v413_v12 = vmul.f32 0.01, %v378_v56  ;;  %vm397_vm8 = vcmp.gt.f32.partialorder %v378_v56, 0.0 }
 0x195   :  { %v429_v20 = vsel %vm397_vm8, %v378_v56, %v413_v12  ;;  %v408_v56 = vmul.f32 0.01, %v363_v23  ;;  %v426_v12 = vsel %vm394_vm12, %v369_v35, %v410_v8 }
 0x196   :  { %v541_v54 = vmul.f32 %v1057_v17, %v429_v20  ;;  %v549_v17 = vpack.c.bf16 %v540_v63, %v539_v33  ;;  %v616_v63 = vld [vmem:[%s1269_s6] sm:$0xff] }
 0x198   :  { %v380_v3 = vpop.f32.mrf.mxu1 }
 0x199   :  { %v381_v9 = vadd.f32 %v1084_v41, %v380_v3  ;;  %v360_v3 = vadd.f32 %v1084_v41, %v359_v46  ;;  %v537_v41 = vmul.f32 %v1079_v40, %v425_v34  ;;  %v1274_v40 = vpack.c.bf16 %v1092_v2, %v1090_v0  ;;  %v624_v0 = vld [vmem:[%s1269_s6 + $0x40] sm:$0xff]  ;;  %v623_v2 = vld [vmem:[%s1269_s6 + $0x38] sm:$0xff] }
 0x19b   :  { %vm398_vm10 = vcmp.gt.f32.partialorder %v381_v9, 0.0  ;;  %v414_v19 = vmul.f32 0.01, %v381_v9  ;;  %v407_v57 = vmul.f32 0.01, %v360_v3  ;;  %vm391_vm15 = vcmp.gt.f32.partialorder %v360_v3, 0.0 }
 0x19d   :  { %v430_v49 = vsel %vm398_vm10, %v381_v9, %v414_v19  ;;  %v424_v9 = vsel %vm392_vm14, %v363_v23, %v408_v56  ;;  %v423_v46 = vsel %vm391_vm15, %v360_v3, %v407_v57 }
 0x19e   :  { %v542_v47 = vmul.f32 %v1074_v32, %v430_v49  ;;  %v538_v32 = vmul.f32 %v1071_v27, %v426_v12  ;;  %v536_v21 = vmul.f32 %v1087_v53, %v424_v9  ;;  %v535_v35 = vmul.f32 %v1069_v26, %v423_v46  ;;  %v631_v26 = vld [vmem:[%s1269_s6 + $0x78] sm:$0xff]  ;;  %v630_v53 = vld [vmem:[%s1269_s6 + $0x70] sm:$0xff] }
 0x19f   :  { %v1273_v27 = vpack.c.bf16 %v1100_v30, %v1098_v29  ;;  %636 = vmatpush.msra.mxu3 %v631_v26  ;;  %v620_v29 = vld [vmem:[%s1269_s6 + $0x20] sm:$0xff]  ;;  %v619_v30 = vld [vmem:[%s1269_s6 + $0x18] sm:$0xff] }
 0x1a0   :  { %v550_v36 = vpack.c.bf16 %v542_v47, %v541_v54  ;;  %v548_v60 = vpack.c.bf16 %v538_v32, %v537_v41 }
 0x1a1   :  { %637 = vmatpush.msra.mxu3 %v630_v53 }
 0x1a2   :  { %551 = vmatpush.bf16.msra.mxu2 %v550_v36  ;;  %v547_v36 = vpack.c.bf16 %v536_v21, %v535_v35 }
 0x1a6   :  { %552 = vmatpush.bf16.msra.mxu2 %v549_v17 }
 0x1aa   :  { %553 = vmatpush.bf16.msra.mxu2 %v548_v60 }
 0x1ae   :  { %554 = vmatpush.bf16.msra.mxu2 %v547_v36 }
 0x1b2   :  { %555 = vmatpush.bf16.msra.mxu2 %v546_v24 }
 0x1b6   :  { %556 = vmatpush.bf16.msra.mxu2 %v1272_v22 }
 0x1ba   :  { %557 = vmatpush.bf16.msra.mxu2 %v1273_v27 }
 0x1be   :  { %558 = vmatpush.bf16.msra.mxu2 %v1274_v40 }
 0x1c1   :  { %559 = vmatmul.bf16.vlgmr.msra.gmra.mxu2 %v882_v28  ;;  %v629_v28 = vld [vmem:[%s1269_s6 + $0x68] sm:$0xff] }
 0x1c2   :  { %638 = vmatpush.msra.mxu3 %v629_v28 }
 0x1d1   :  { %564 = vmatmul.bf16.gmra.mxu2 %v903_v39  ;;  %v628_v39 = vld [vmem:[%s1269_s6 + $0x60] sm:$0xff] }
 0x1d2   :  { %639 = vmatpush.msra.mxu3 %v628_v39 }
 0x1e1   :  { %569 = vmatmul.bf16.gmra.mxu2 %v927_v51  ;;  %v627_v51 = vld [vmem:[%s1269_s6 + $0x58] sm:$0xff] }
 0x1e2   :  { %640 = vmatpush.msra.mxu3 %v627_v51 }
 0x1f1   :  { %574 = vmatmul.bf16.gmra.mxu2 %v948_v62  ;;  %v626_v62 = vld [vmem:[%s1269_s6 + $0x50] sm:$0xff] }
 0x1f2   :  { %641 = vmatpush.msra.mxu3 %v626_v62 }
 0x201   :  { %579 = vmatmul.bf16.gmra.mxu2 %v954_v4  ;;  %v625_v4 = vld [vmem:[%s1269_s6 + $0x48] sm:$0xff] }
 0x202   :  { %642 = vmatpush.msra.mxu3 %v625_v4 }
 0x204   :  { %643 = vmatpush.msra.mxu3 %v624_v0 }
 0x206   :  { %644 = vmatpush.msra.mxu3 %v623_v2 }
 0x211   :  { %584 = vmatmul.bf16.gmra.mxu2 %v978_v16  ;;  %v622_v16 = vld [vmem:[%s1269_s6 + $0x30] sm:$0xff] }
 0x212   :  { %645 = vmatpush.msra.mxu3 %v622_v16 }
 0x214   :  { %646 = vmatpush.msra.mxu3 %v621_v7 }
 0x216   :  { %647 = vmatpush.msra.mxu3 %v620_v29 }
 0x218   :  { %648 = vmatpush.msra.mxu3 %v619_v30 }
 0x21a   :  { %649 = vmatpush.msra.mxu3 %v618_v59 }
 0x21c   :  { %650 = vmatpush.msra.mxu3 %v617_v44 }
 0x21e   :  { %651 = vmatpush.msra.mxu3 %v616_v63 }
 0x221   :  { %589 = vmatmul.bf16.gmra.mxu2 %v1008_v31 }
 0x231   :  { %594 = vmatmul.bf16.gmra.mxu2 %v1014_v37 }
 0x244   :  { %v560_v24 = vpop.f32.mrf.mxu2 }
 0x245   :  { %v600_v14 = vmul.f32 %v560_v24, %v1017_v38 }
 0x247   :  { %652 = vmatmul.f32.vlgmr.msra.gmra.mxu3 %v600_v14 }
 0x24c   :  { %v562_v15 = vpop.f32.mrf.mxu2 }
 0x24d   :  { %v601_v31 = vmul.f32 %v562_v15, %v1020_v42 }
 0x24f   :  { %655 = vmatmul.f32.gmra.mxu3 %v601_v31 }
 0x254   :  { %v565_v19 = vpop.f32.mrf.mxu2 }
 0x255   :  { %v602_v20 = vmul.f32 %v565_v19, %v1023_v45 }
 0x257   :  { %658 = vmatmul.f32.gmra.mxu3 %v602_v20 }
 0x25c   :  { %v567_v23 = vpop.f32.mrf.mxu2 }
 0x25d   :  { %v603_v8 = vmul.f32 %v567_v23, %v1026_v48 }
 0x25f   :  { %661 = vmatmul.f32.gmra.mxu3 %v603_v8 }
 0x264   :  { %v570_v49 = vpop.f32.mrf.mxu2 }
 0x265   :  { %v604_v50 = vmul.f32 %v570_v49, %v1029_v52 }
 0x267   :  { %664 = vmatmul.f32.gmra.mxu3 %v604_v50 }
 0x26c   :  { %v572_v37 = vpop.f32.mrf.mxu2 }
 0x26d   :  { %v605_v38 = vmul.f32 %v572_v37, %v1032_v55 }
 0x26f   :  { %667 = vmatmul.f32.gmra.mxu3 %v605_v38 }
 0x274   :  { %v575_v54 = vpop.f32.mrf.mxu2 }
 0x275   :  { %v606_v42 = vmul.f32 %v575_v54, %v1035_v58 }
 0x277   :  { %670 = vmatmul.f32.gmra.mxu3 %v606_v42 }
 0x27c   :  { %v577_v47 = vpop.f32.mrf.mxu2 }
 0x27d   :  { %v607_v45 = vmul.f32 %v577_v47, %v1038_v61 }
 0x27f   :  { %673 = vmatmul.f32.gmra.mxu3 %v607_v45 }
 0x284   :  { %v580_v3 = vpop.f32.mrf.mxu2 }
 0x285   :  { %v608_v48 = vmul.f32 %v580_v3, %v1041_v1 }
 0x287   :  { %676 = vmatmul.f32.gmra.mxu3 %v608_v48 }
 0x28c   :  { %v582_v43 = vpop.f32.mrf.mxu2 }
 0x28d   :  { %v609_v52 = vmul.f32 %v582_v43, %v1046_v6 }
 0x28f   :  { %679 = vmatmul.f32.gmra.mxu3 %v609_v52 }
 0x294   :  { %v585_v56 = vpop.f32.mrf.mxu2 }
 0x295   :  { %v610_v55 = vmul.f32 %v585_v56, %v1044_v5 }
 0x297   :  { %682 = vmatmul.f32.gmra.mxu3 %v610_v55 }
 0x29c   :  { %v587_v12 = vpop.f32.mrf.mxu2 }
 0x29d   :  { %v611_v58 = vmul.f32 %v587_v12, %v1054_v13  ;;  %v766_v13 = vld [vmem:[%s1270_s7] ss:$0 sm:$0xff] }
 0x29f   :  { %685 = vmatmul.f32.gmra.mxu3 %v611_v58 }
 0x2a4   :  { %v590_v33 = vpop.f32.mrf.mxu2 }
 0x2a5   :  { %v612_v61 = vmul.f32 %v590_v33, %v1051_v11 }
 0x2a7   :  { %688 = vmatmul.f32.gmra.mxu3 %v612_v61 }
 0x2ac   :  { %v592_v57 = vpop.f32.mrf.mxu2 }
 0x2ad   :  { %v613_v1 = vmul.f32 %v592_v57, %v1049_v10 }
 0x2af   :  { %691 = vmatmul.f32.gmra.mxu3 %v613_v1 }
 0x2b4   :  { %v595_v34 = vpop.f32.mrf.mxu2 }
 0x2b5   :  { %v614_v6 = vmul.f32 %v595_v34, %v1067_v25 }
 0x2b7   :  { %694 = vmatmul.f32.gmra.mxu3 %v614_v6 }
 0x2bc   :  { %v597_v17 = vpop.f32.mrf.mxu2 }
 0x2bd   :  { %v615_v5 = vmul.f32 %v597_v17, %v1059_v18 }
 0x2bf   :  { %697 = vmatmul.f32.gmra.mxu3 %v615_v5 }
 0x2ca   :  { %v653_v32 = vpop.f32.mrf.mxu3 }
 0x2cb   :  { %v654_v9 = vadd.f32 %v766_v13, %v653_v32 }
 0x2cd   :  { %701 = vst [vmem:[%s1271_s8] sm:$0xff] %v654_v9 }
 0x2d2   :  { %v656_v10 = vpop.f32.mrf.mxu3 }
 0x2d3   :  { %v657_v11 = vadd.f32 %v766_v13, %v656_v10 }
 0x2d5   :  { %702 = vst [vmem:[%s1271_s8 + $0x8] sm:$0xff] %v657_v11 }
 0x2da   :  { %v659_v25 = vpop.f32.mrf.mxu3 }
 0x2db   :  { %v660_v41 = vadd.f32 %v766_v13, %v659_v25 }
 0x2dd   :  { %703 = vst [vmem:[%s1271_s8 + $0x10] sm:$0xff] %v660_v41 }
 0x2e2   :  { %v662_v18 = vpop.f32.mrf.mxu3 }
 0x2e3   :  { %v663_v46 = vadd.f32 %v766_v13, %v662_v18 }
 0x2e5   :  { %704 = vst [vmem:[%s1271_s8 + $0x18] sm:$0xff] %v663_v46 }
 0x2ea   :  { %v665_v60 = vpop.f32.mrf.mxu3 }
 0x2eb   :  { %v666_v21 = vadd.f32 %v766_v13, %v665_v60 }
 0x2ed   :  { %705 = vst [vmem:[%s1271_s8 + $0x20] sm:$0xff] %v666_v21 }
 0x2f2   :  { %v668_v35 = vpop.f32.mrf.mxu3 }
 0x2f3   :  { %v669_v36 = vadd.f32 %v766_v13, %v668_v35 }
 0x2f5   :  { %706 = vst [vmem:[%s1271_s8 + $0x28] sm:$0xff] %v669_v36 }
 0x2fa   :  { %v671_v22 = vpop.f32.mrf.mxu3 }
 0x2fb   :  { %v672_v27 = vadd.f32 %v766_v13, %v671_v22 }
 0x2fd   :  { %707 = vst [vmem:[%s1271_s8 + $0x30] sm:$0xff] %v672_v27 }
 0x302   :  { %v674_v40 = vpop.f32.mrf.mxu3 }
 0x303   :  { %v675_v26 = vadd.f32 %v766_v13, %v674_v40 }
 0x305   :  { %708 = vst [vmem:[%s1271_s8 + $0x38] sm:$0xff] %v675_v26 }
 0x30a   :  { %v677_v53 = vpop.f32.mrf.mxu3 }
 0x30b   :  { %v678_v28 = vadd.f32 %v766_v13, %v677_v53 }
 0x30d   :  { %709 = vst [vmem:[%s1271_s8 + $0x40] sm:$0xff] %v678_v28 }
 0x312   :  { %v680_v39 = vpop.f32.mrf.mxu3 }
 0x313   :  { %v681_v51 = vadd.f32 %v766_v13, %v680_v39 }
 0x315   :  { %710 = vst [vmem:[%s1271_s8 + $0x48] sm:$0xff] %v681_v51 }
 0x31a   :  { %v683_v62 = vpop.f32.mrf.mxu3 }
 0x31b   :  { %v684_v4 = vadd.f32 %v766_v13, %v683_v62 }
 0x31d   :  { %711 = vst [vmem:[%s1271_s8 + $0x50] sm:$0xff] %v684_v4 }
 0x322   :  { %v686_v0 = vpop.f32.mrf.mxu3 }
 0x323   :  { %v687_v2 = vadd.f32 %v766_v13, %v686_v0 }
 0x325   :  { %712 = vst [vmem:[%s1271_s8 + $0x58] sm:$0xff] %v687_v2 }
 0x32a   :  { %v689_v16 = vpop.f32.mrf.mxu3 }
 0x32b   :  { %v690_v7 = vadd.f32 %v766_v13, %v689_v16 }
 0x32d   :  { %713 = vst [vmem:[%s1271_s8 + $0x60] sm:$0xff] %v690_v7 }
 0x332   :  { %v692_v29 = vpop.f32.mrf.mxu3 }
 0x333   :  { %v693_v30 = vadd.f32 %v766_v13, %v692_v29 }
 0x335   :  { %714 = vst [vmem:[%s1271_s8 + $0x68] sm:$0xff] %v693_v30 }
 0x33a   :  { %v695_v59 = vpop.f32.mrf.mxu3 }
 0x33b   :  { %v696_v44 = vadd.f32 %v766_v13, %v695_v59 }
 0x33d   :  { %715 = vst [vmem:[%s1271_s8 + $0x70] sm:$0xff] %v696_v44 }
 0x342   :  { %v698_v63 = vpop.f32.mrf.mxu3 }
 0x343   :  { %v699_v24 = vadd.f32 %v766_v13, %v698_v63 }
 0x345   :  { %716 = vst [vmem:[%s1271_s8 + $0x78] sm:$0xff] %v699_v24 }

</bundles_post_ra>
